<compile_context>
chip_gen: v7x
topology: tpu7x:2x2x1
jax: 0.10.0
libtpu: 0.0.40
codegen_flags: <defaults>
</compile_context>

<pallas_src>
import functools

import jax
import jax.numpy as jnp
from jax.experimental import pallas as pl
from jax.experimental.pallas import tpu as pltpu


def _spectral_loss_kernel(w_ref, b_ref, a_ref, out_ref, acc_ref, *, compute_dtype):
    """Grid = (num_i_blocks, num_j_blocks); j is the (sequential) reduction axis.

    w_ref : (tm, tn)      W tile (streamed from HBM)
    b_ref : (tn, k+2)     augmented Y rows for the j block  [Y, 1, sq]
    a_ref : (tm, k+2)     augmented Y rows for the i block  [-2Y, sq, 1]
    out_ref: (1, 1, 128)  per-i-block partial sum (broadcast across lanes)
    acc_ref: (tm, k+2)    f32 accumulator of W[i_blk, :] @ B
    """
    j = pl.program_id(1)

    @pl.when(j == 0)
    def _():
        acc_ref[...] = jnp.zeros_like(acc_ref)

    # Single MXU matmul per W tile; bf16 operands (default), f32 accumulation.
    acc_ref[...] += jnp.dot(
        w_ref[...].astype(compute_dtype),
        b_ref[...].astype(compute_dtype),
        preferred_element_type=jnp.float32,
    )

    @pl.when(j == pl.num_programs(1) - 1)
    def _():
        # Once per i-block: elementwise + cross-lane reduce over (tm, k+2).
        partial = jnp.sum(a_ref[...] * acc_ref[...])
        out_ref[...] = jnp.broadcast_to(partial, out_ref.shape)


def _round_up(x: int, n: int) -> int:
    return ((x + n - 1) // n) * n


def _pick_tiling(m: int, tm_req: int, tn_req: int):
    """Choose (m_pad, tm, tn): tiles are multiples of 128 and divide m_pad."""
    m128 = _round_up(m, 128)
    tm_req = max(128, min((tm_req // 128) * 128, m128))
    tn_req = max(128, min((tn_req // 128) * 128, m128))

    # Keep the double-buffered f32 W tile under ~32 MiB (v7x physical VMEM is
    # 64 MiB); shrink the reduction-axis tile first.
    while tn_req > 128 and 2 * tm_req * tn_req * 4 > 32 * 1024 * 1024:
        tn_req -= 128

    # Pad m up to a multiple of tn_req if that costs <~12.5% extra W traffic,
    # otherwise pad only to a multiple of 128 and snap tiles to divisors.
    m_pad_big = _round_up(m, tn_req)
    if m_pad_big * m_pad_big <= 1.125 * m128 * m128:
        m_pad = m_pad_big
    else:
        m_pad = m128
    q = m_pad // 128

    def snap(req):  # largest multiple-of-128 divisor of m_pad that is <= req
        d = req // 128
        while q % d:
            d -= 1
        return d * 128

    tn = snap(tn_req)
    tm = snap(tm_req)

    # Keep at least 2 i-blocks so the "parallel" axis can be split across
    # TensorCores (v7x megacore); grow tn (not tm) for DMA amortization.
    if m_pad // tm < 2 and m_pad >= 256:
        tm = snap(max(128, ((m_pad // 2) // 128) * 128))
    return m_pad, tm, tn


def _vmem_limit_bytes(tm: int, tn: int) -> int:
    """Derive the scoped-VMEM limit from the actual tile footprint."""
    w_bytes = 2 * tm * tn * 4        # double-buffered W tile (worst case f32)
    b_bytes = 2 * tn * 128 * 4       # double-buffered B tile, lane-padded
    a_bytes = 2 * tm * 128 * 4       # double-buffered A tile, lane-padded
    acc_bytes = tm * 128 * 4         # accumulator scratch, lane-padded
    misc = 1 << 20                   # outputs, descriptors, slack
    total = int(1.25 * (w_bytes + b_bytes + a_bytes + acc_bytes + misc))
    return min(max(total, 16 * 1024 * 1024), 64 * 1024 * 1024)


def spectralnet_loss(W: jax.Array, Y: jax.Array, is_normalized: bool = False,
                     *, tm: int = 512, tn: int = 2048,
                     use_bf16: bool = True) -> jax.Array:
    """Pallas TPU implementation of SpectralNetLoss.forward."""
    m, k = Y.shape
    assert W.shape == (m, m)

    if is_normalized:
        # Matches the PyTorch reference; a zero-degree row yields NaN there too.
        D = jnp.sum(W, axis=1)
        Y = Y / jnp.sqrt(D)[:, None]

    Yf = Y.astype(jnp.float32)
    sq = jnp.sum(Yf * Yf, axis=1, keepdims=True)             # (m, 1)
    ones = jnp.ones((m, 1), jnp.float32)
    # sum(A * (W @ B)) == sum_ij W_ij * (sq_i + sq_j - 2 * Y_i . Y_j)
    A = jnp.concatenate([-2.0 * Yf, sq, ones], axis=1)        # (m, k+2)
    B = jnp.concatenate([Yf, ones, sq], axis=1)               # (m, k+2)
    k_aug = k + 2

    m_pad, tm, tn = _pick_tiling(m, tm, tn)
    if m_pad != m:
        pad = m_pad - m
        # Zero rows/cols contribute 0 to the loss.
        W = jnp.pad(W, ((0, pad), (0, pad)))
        A = jnp.pad(A, ((0, pad), (0, 0)))
        B = jnp.pad(B, ((0, pad), (0, 0)))
    n_i, n_j = m_pad // tm, m_pad // tn

    compute_dtype = jnp.bfloat16 if use_bf16 else jnp.float32
    kernel = functools.partial(_spectral_loss_kernel, compute_dtype=compute_dtype)

    partials = pl.pallas_call(
        kernel,
        out_shape=jax.ShapeDtypeStruct((n_i, 1, 128), jnp.float32),
        grid_spec=pltpu.PrefetchScalarGridSpec(
            num_scalar_prefetch=0,
            grid=(n_i, n_j),
            in_specs=[
                pl.BlockSpec((tm, tn), lambda i, j: (i, j)),       # W tile
                pl.BlockSpec((tn, k_aug), lambda i, j: (j, 0)),    # B rows (j)
                pl.BlockSpec((tm, k_aug), lambda i, j: (i, 0)),    # A rows (i)
            ],
            out_specs=pl.BlockSpec((1, 1, 128), lambda i, j: (i, 0, 0)),
            scratch_shapes=[pltpu.VMEM((tm, k_aug), jnp.float32)],
        ),
        compiler_params=pltpu.CompilerParams(
            dimension_semantics=("parallel", "arbitrary"),
            vmem_limit_bytes=_vmem_limit_bytes(tm, tn),
        ),
    )(W, B, A)

    return jnp.sum(partials[:, 0, 0]) / jnp.float32(2 * m)


def spectralnet_loss_ref(W, Y, is_normalized=False):
    """Plain-JAX reference matching the PyTorch module (cdist-based)."""
    m = Y.shape[0]
    if is_normalized:
        D = jnp.sum(W, axis=1)
        Y = Y / jnp.sqrt(D)[:, None]
    diff = Y[:, None, :] - Y[None, :, :]
    Dy2 = jnp.sum(diff * diff, axis=-1)
    return jnp.sum(W * Dy2) / (2 * m)


if __name__ == "__main__":
    key = jax.random.PRNGKey(0)
    k1, k2 = jax.random.split(key)

    m, kdim = 256, 16
    # Affinity matrix: symmetric, non-negative.
    W_raw = jax.random.uniform(k1, (m, m), dtype=jnp.float32)
    W = 0.5 * (W_raw + W_raw.T)
    Y = jax.random.normal(k2, (m, kdim), dtype=jnp.float32)

    ref = spectralnet_loss_ref(W, Y, is_normalized=False)

    # f32 matmul path (exact check against the reference).
    loss_f32 = spectralnet_loss(W, Y, is_normalized=False, use_bf16=False)
    loss_f32 = jax.block_until_ready(loss_f32)
    assert jnp.allclose(loss_f32, ref, rtol=1e-4, atol=1e-4), (loss_f32, ref)

    # Default bf16-operand path (looser tolerance for the bf16 rounding).
    loss_bf16 = spectralnet_loss(W, Y, is_normalized=False)
    loss_bf16 = jax.block_until_ready(loss_bf16)
    assert jnp.allclose(loss_bf16, ref, rtol=2e-2, atol=2e-2), (loss_bf16, ref)

    # Small explicit tiles -> exercises a 2x2 grid, j-accumulation, per-i partials.
    loss_t = spectralnet_loss(W, Y, is_normalized=False, tm=128, tn=128,
                              use_bf16=False)
    loss_t = jax.block_until_ready(loss_t)
    assert jnp.allclose(loss_t, ref, rtol=1e-4, atol=1e-4), (loss_t, ref)

    # Non-tile-divisible m -> exercises the zero-padding path.
    m2 = 200
    W2 = W[:m2, :m2]
    Y2 = Y[:m2]
    ref2 = spectralnet_loss_ref(W2, Y2, is_normalized=False)
    loss_p = spectralnet_loss(W2, Y2, is_normalized=False, use_bf16=False)
    loss_p = jax.block_until_ready(loss_p)
    assert jnp.allclose(loss_p, ref2, rtol=1e-4, atol=1e-4), (loss_p, ref2)

    # Normalized variant.
    ref_n = spectralnet_loss_ref(W, Y, is_normalized=True)
    loss_n = spectralnet_loss(W, Y, is_normalized=True, tm=128, tn=128,
                              use_bf16=False)
    loss_n = jax.block_until_ready(loss_n)
    assert jnp.allclose(loss_n, ref_n, rtol=1e-4, atol=1e-4), (loss_n, ref_n)

    print("KERNEL_OK")
</pallas_src>

<mosaic_0001>
module attributes {stable_mosaic.version = 11 : i64} {
  func.func @_spectral_loss_kernel(%arg0: i32, %arg1: i32, %arg2: memref<128x256xf32, #tpu.memory_space<vmem>>, %arg3: memref<256x18xf32, #tpu.memory_space<vmem>>, %arg4: memref<128x18xf32, #tpu.memory_space<vmem>>, %arg5: memref<1x1x128xf32, #tpu.memory_space<vmem>>, %arg6: memref<128x18xf32, #tpu.memory_space<vmem>>) attributes {dimension_semantics = [#tpu.dimension_semantics<parallel>, #tpu.dimension_semantics<arbitrary>], iteration_bounds = array<i64: 2, 1>, scalar_prefetch = 0 : i64, scratch_operands = 1 : i64, tpu.core_type = #tpu.core_type<tc>, window_params = [{transform_indices = @transform_0, window_bounds = array<i64: 128, 256>}, {transform_indices = @transform_1, window_bounds = array<i64: 256, 18>}, {transform_indices = @transform_2, window_bounds = array<i64: 128, 18>}, {transform_indices = @transform_3, window_bounds = array<i64: 1, 1, 128>}]} {
    %c0_i32 = arith.constant 0 : i32
    %0 = arith.cmpi eq, %arg1, %c0_i32 : i32
    %1 = arith.extui %0 : i1 to i32
    %c0_i32_0 = arith.constant 0 : i32
    %2 = arith.cmpi ne, %1, %c0_i32_0 : i32
    scf.if %2 {
      %cst_10 = arith.constant 0.000000e+00 : f32
      %12 = vector.broadcast %cst_10 : f32 to vector<128x18xf32>
      %c0_11 = arith.constant 0 : index
      %c0_12 = arith.constant 0 : index
      %13 = vector.load %arg6[%c0_11, %c0_12] : memref<128x18xf32, #tpu.memory_space<vmem>>, vector<128x18xf32>
      tpu.vector_store %arg6[%c0_11, %c0_12], %12 {strides = array<i32>} : memref<128x18xf32, #tpu.memory_space<vmem>>, vector<128x18xf32>,
    } else {
    }
    %c0 = arith.constant 0 : index
    %c0_1 = arith.constant 0 : index
    %3 = vector.load %arg6[%c0, %c0_1] : memref<128x18xf32, #tpu.memory_space<vmem>>, vector<128x18xf32>
    %c0_2 = arith.constant 0 : index
    %c0_3 = arith.constant 0 : index
    %4 = vector.load %arg2[%c0_2, %c0_3] : memref<128x256xf32, #tpu.memory_space<vmem>>, vector<128x256xf32>
    %c0_4 = arith.constant 0 : index
    %c0_5 = arith.constant 0 : index
    %5 = vector.load %arg3[%c0_4, %c0_5] : memref<256x18xf32, #tpu.memory_space<vmem>>, vector<256x18xf32>
    %cst = arith.constant dense<0.000000e+00> : vector<128x18xf32>
    %6 = tpu.matmul %4, %5, %cst {dimension_numbers = #tpu.dot_dimension_numbers<[1], [0], [0], [1], [0, 0, 1, 1], [], []>} : vector<128x256xf32>, vector<256x18xf32>, vector<128x18xf32> -> vector<128x18xf32>
    %7 = arith.addf %3, %6 : vector<128x18xf32>
    %c0_6 = arith.constant 0 : index
    %c0_7 = arith.constant 0 : index
    %8 = vector.load %arg6[%c0_6, %c0_7] : memref<128x18xf32, #tpu.memory_space<vmem>>, vector<128x18xf32>
    tpu.vector_store %arg6[%c0_6, %c0_7], %7 {strides = array<i32>} : memref<128x18xf32, #tpu.memory_space<vmem>>, vector<128x18xf32>,
    %c0_i32_8 = arith.constant 0 : i32
    %9 = arith.cmpi eq, %arg1, %c0_i32_8 : i32
    %10 = arith.extui %9 : i1 to i32
    %c0_i32_9 = arith.constant 0 : i32
    %11 = arith.cmpi ne, %10, %c0_i32_9 : i32
    scf.if %11 {
      %c0_10 = arith.constant 0 : index
      %c0_11 = arith.constant 0 : index
      %12 = vector.load %arg4[%c0_10, %c0_11] : memref<128x18xf32, #tpu.memory_space<vmem>>, vector<128x18xf32>
      %c0_12 = arith.constant 0 : index
      %c0_13 = arith.constant 0 : index
      %13 = vector.load %arg6[%c0_12, %c0_13] : memref<128x18xf32, #tpu.memory_space<vmem>>, vector<128x18xf32>
      %14 = arith.mulf %12, %13 : vector<128x18xf32>
      %15 = vector.shape_cast %14 : vector<128x18xf32> to vector<1x128x18xf32>
      %cst_14 = arith.constant dense<0.000000e+00> : vector<1xf32>
      %16 = vector.multi_reduction <add>, %15, %cst_14 [1, 2] : vector<1x128x18xf32> to vector<1xf32>
      %17 = vector.shape_cast %16 : vector<1xf32> to vector<1x1x1xf32>
      %18 = vector.extract %17[0, 0, 0] : f32 from vector<1x1x1xf32>
      %19 = vector.broadcast %18 : f32 to vector<1x1x128xf32>
      %c0_15 = arith.constant 0 : index
      %c0_16 = arith.constant 0 : index
      %c0_17 = arith.constant 0 : index
      %20 = vector.load %arg5[%c0_15, %c0_16, %c0_17] : memref<1x1x128xf32, #tpu.memory_space<vmem>>, vector<1x1x128xf32>
      tpu.vector_store %arg5[%c0_15, %c0_16, %c0_17], %19 {strides = array<i32>} : memref<1x1x128xf32, #tpu.memory_space<vmem>>, vector<1x1x128xf32>,
    } else {
    }
    return
  }
  func.func @transform_0(%arg0: i32, %arg1: i32) -> (i32, i32) {
    %c0_i32 = arith.constant 0 : i32
    return %arg0, %arg1 : i32, i32
  }
  func.func @transform_1(%arg0: i32, %arg1: i32) -> (i32, i32) {
    %c0_i32 = arith.constant 0 : i32
    %c0_i32_0 = arith.constant 0 : i32
    return %arg1, %c0_i32 : i32, i32
  }
  func.func @transform_2(%arg0: i32, %arg1: i32) -> (i32, i32) {
    %c0_i32 = arith.constant 0 : i32
    %c0_i32_0 = arith.constant 0 : i32
    return %arg0, %c0_i32 : i32, i32
  }
  func.func @transform_3(%arg0: i32, %arg1: i32) -> (i32, i32, i32) {
    %c0_i32 = arith.constant 0 : i32
    %c0_i32_0 = arith.constant 0 : i32
    %c0_i32_1 = arith.constant 0 : i32
    return %arg0, %c0_i32, %c0_i32_0 : i32, i32, i32
  }
}

</mosaic_0001>

<bundles_post_ra>
// kernel: tpu_custom_call.1
= control target key start
LH: loop header
LB: loop body
LE: loop exit
PB: predicated region body
PF: predicated region fallthrough
CT: control target
= control target key end

     0   :  { %8 = vsyncpa [#allocation4], 0  ;;  %s1344_s0 = inlined_call_operand.vmem [shape: f32[256,256], index: 0, kind: input, shape index: {}]   ;;  %s1345_s1 = inlined_call_operand.vmem [shape: f32[256,18], index: 1, kind: input, shape index: {}]   ;;  %s1346_s2 = inlined_call_operand.vmem [shape: f32[256,18], index: 2, kind: input, shape index: {}]   ;;  %s1347_s3 = inlined_call_operand.hbm [shape: f32[2,1,128], index: 3, kind: output, shape index: {}]  }
   0x1   :  { %10 = vsyncpa [#allocation4 + $0x1], 0  ;;  %s1029_s12 = smov 0   ;;  %s1031_s13 = smov 0  }
   0x2   :  { %s1033_s14 = smov 0   ;;  %s1035_s15 = smov 0  }
   0x3   :  { %s1037_s16 = smov 0   ;;  %s1039_s17 = smov 0  }
   0x4 LB: > { %s726_s18 = sadd.s32 4294967295, %s1005_s17   ;;  %s727_s19 = sadd.s32 4294967294, %s1005_s17   ;;  %s1005_s17 = sphi %s1039_s17, %s16_s17   ;;  %s1001_s16 = sphi %s1037_s16, %s1354_s16   ;;  %s997_s15 = sphi %s1035_s15, %s1353_s15   ;;  %s993_s14 = sphi %s1033_s14, %s1352_s14   ;;  %s989_s13 = sphi %s1031_s13, %s1351_s13   ;;  %s985_s12 = sphi %s1029_s12, %s1350_s12  }
   0x5   : > { %s28_s20 = sadd.s32 1, %s1001_s16  ;;  %s115_s21 = sadd.s32 1, %s993_s14 }
   0x6   : > { %p30_p0 = scmp.ge.s32.totalorder %s28_s20, 2  ;;  %p125_p1 = scmp.ne.s32.totalorder %s993_s14, %s989_s13 }
   0x7   : > { %p126_p2 = scmp.eq.s32.totalorder %s726_s18, 1  ;;  %p131_p3 = scmp.ne.s32.totalorder %s989_s13, %s985_s12 }
   0x8   : > { %s1356_s20 = smov (%p30_p0, %s28_s20), 0  ;;  %p132_p5 = scmp.eq.s32.totalorder %s727_s19, 1 }
   0x9   : > { %p1067_p4 = por %p126_p2, %p125_p1  ;;  %s112_s23 = ssub.s32 %s1001_s16, %s1356_s20 }
   0xa   : > { %p731_p6 = scmp.ge.s32.totalorder %s1005_s17, 1  ;;  %p113_p7 = scmp.eq.s32.totalorder %s112_s23, 0 }
   0xb   : > { %p1074_p8 = por %p132_p5, %p131_p3  ;;  %p183_p9 = scmp.lt.s32.totalorder %s1005_s17, 3 }
   0xc   : > { %s1080_s25 = scalar_select %p113_p7, %s993_s14, %s115_s21  }
   0xd   : > { %p184_p10 = pnand %p731_p6, %p183_p9 }
   0xe   : > { %v330_v0 = vld [vmem:[%s1345_s1 + $0x80] sm:$0xff] (!%p184_p10)  ;;  %v331_v1 = vld [vmem:[%s1345_s1 + $0x88] sm:$0xff] (!%p184_p10)  ;;  %s1091_s5 = sshll.u32 (!%p184_p10), %s997_s15, 4  ;;  %v332_v5 = vld [vmem:[%s1345_s1 + $0x90] sm:$0xff] (!%p184_p10)  ;;  %vm249_vm0 = vcmask (!%p184_p10), 146432   ;;  %s1008_s27 = smov (!%p184_p10), [#allocation3]  }
   0xf   : > { %187 = sbr.rel (%p184_p10) target bundleno = 542 (0x21e), region = 32  ;;  %v314_v2 = vld [vmem:[%s1345_s1] sm:$0xff] (!%p184_p10)  ;;  %v821_v3 = vpack.c.bf16 (!%p184_p10), %v331_v1, %v330_v0  ;;  %v315_v4 = vld [vmem:[%s1345_s1 + $0x8] sm:$0xff] (!%p184_p10)  ;;  %v333_v6 = vld [vmem:[%s1345_s1 + $0x98] sm:$0xff] (!%p184_p10)  ;;  %p223_p11 = scmp.lt.s32.totalorder (!%p184_p10), %s1091_s5, 31 }
  0x10   : > { %v823_v7 = vpack.c.bf16 (!%p184_p10), %v315_v4, %v314_v2  ;;  %v825_v8 = vpack.c.bf16 (!%p184_p10), %v333_v6, %v332_v5  ;;  %v316_v9 = vld [vmem:[%s1345_s1 + $0x10] sm:$0xff] (!%p184_p10)  ;;  %v317_v10 = vld [vmem:[%s1345_s1 + $0x18] sm:$0xff] (!%p184_p10)  ;;  %v334_v11 = vld [vmem:[%s1345_s1 + $0xa0] sm:$0xff] (!%p184_p10)  ;;  %s1299_s19 = scalar_lea.hbm (!%p184_p10), %s1347_s3, %s1091_s5  ;;  %s931_s28 = sshll.u32 (!%p184_p10), %s1008_s27, 4  ;;  %s932_s28 = int_to_ptr.vmem [resolvable:$false] %s931_s28 }
  0x11   : > { %822 = vmatprep.subr.bf16.mxu0 (!%p184_p10), %v821_v3  ;;  %v335_v12 = vld [vmem:[%s1345_s1 + $0xa8] sm:$0xff] (!%p184_p10)  ;;  %853 = vmatprep.subr.bf16.mxu1 (!%p184_p10), %v821_v3  ;;  %v827_v13 = vpack.c.bf16 (!%p184_p10), %v317_v10, %v316_v9  ;;  %v318_v15 = vld [vmem:[%s1345_s1 + $0x20] sm:$0xff] (!%p184_p10)  ;;  %v336_v17 = vld [vmem:[%s1345_s1 + $0xb0] sm:$0xff] (!%p184_p10)  ;;  %s933_s30 = scalar_lea.vmem (!%p184_p10), %s932_s28, 32 }
  0x12   : > { %824 = vmatpush3.bf16.msra.mxu0 (!%p184_p10), %v823_v7  ;;  %861 = vmatpush3.bf16.msra.mxu1 (!%p184_p10), %v823_v7  ;;  %v829_v14 = vpack.c.bf16 (!%p184_p10), %v335_v12, %v334_v11  ;;  %v319_v16 = vld [vmem:[%s1345_s1 + $0x28] sm:$0xff] (!%p184_p10)  ;;  %v337_v18 = vld [vmem:[%s1345_s1 + $0xb8] sm:$0xff] (!%p184_p10)  ;;  %v320_v21 = vld [vmem:[%s1345_s1 + $0x30] sm:$0xff] (!%p184_p10) }
  0x13   : > { %826 = vmatprep.subr.bf16.mxu0 (!%p184_p10), %v825_v8  ;;  %854 = vmatprep.subr.bf16.mxu1 (!%p184_p10), %v825_v8  ;;  %v831_v19 = vpack.c.bf16 (!%p184_p10), %v319_v16, %v318_v15  ;;  %v833_v20 = vpack.c.bf16 (!%p184_p10), %v337_v18, %v336_v17  ;;  %v321_v22 = vld [vmem:[%s1345_s1 + $0x38] sm:$0xff] (!%p184_p10)  ;;  %v338_v23 = vld [vmem:[%s1345_s1 + $0xc0] sm:$0xff] (!%p184_p10)  ;;  %v339_v24 = vld [vmem:[%s1345_s1 + $0xc8] sm:$0xff] (!%p184_p10)  ;;  %v1007_v16 = vmov (!%p184_p10), 0.0  }
  0x14   : > { %v835_v26 = vpack.c.bf16 (!%p184_p10), %v321_v22, %v320_v21  ;;  %v837_v27 = vpack.c.bf16 (!%p184_p10), %v339_v24, %v338_v23  ;;  %v322_v28 = vld [vmem:[%s1345_s1 + $0x40] sm:$0xff] (!%p184_p10)  ;;  %v323_v29 = vld [vmem:[%s1345_s1 + $0x48] sm:$0xff] (!%p184_p10)  ;;  %v340_v31 = vld [vmem:[%s1345_s1 + $0xd0] sm:$0xff] (!%p184_p10)  ;;  %250 = vst.msk [vmem:[#allocation2] sm:$0xff] (!%p184_p10), %vm249_vm0, %v1007_v16 }
  0x15   : > { %v341_v32 = vld [vmem:[%s1345_s1 + $0xd8] sm:$0xff] (!%p184_p10)  ;;  %v839_v33 = vpack.c.bf16 (!%p184_p10), %v323_v29, %v322_v28  ;;  %v324_v35 = vld [vmem:[%s1345_s1 + $0x50] sm:$0xff] (!%p184_p10)  ;;  %v342_v37 = vld [vmem:[%s1345_s1 + $0xe0] sm:$0xff] (!%p184_p10)  ;;  %251 = vst.msk [vmem:[#allocation2 + $0x8] sm:$0xff] (!%p184_p10), %vm249_vm0, %v1007_v16 }
  0x16   : > { %s1116_s29 = scalar_select %p223_p11, %s1091_s5, 31  ;;  %828 = vmatpush3.bf16.msra.mxu0 %v827_v13  ;;  %862 = vmatpush3.bf16.msra.mxu1 %v827_v13  ;;  %v841_v34 = vpack.c.bf16 %v341_v32, %v340_v31  ;;  %v325_v36 = vld [vmem:[%s1345_s1 + $0x58] sm:$0xff]  ;;  %v343_v38 = vld [vmem:[%s1345_s1 + $0xe8] sm:$0xff]  ;;  %v326_v41 = vld [vmem:[%s1345_s1 + $0x60] sm:$0xff]  ;;  %252 = vst.msk [vmem:[#allocation2 + $0x10] sm:$0xff] %vm249_vm0, %v1007_v16 }
  0x17   : > { %830 = vmatprep.subr.bf16.mxu0 %v829_v14  ;;  %855 = vmatprep.subr.bf16.mxu1 %v829_v14  ;;  %v843_v39 = vpack.c.bf16 %v325_v36, %v324_v35  ;;  %v845_v40 = vpack.c.bf16 %v343_v38, %v342_v37  ;;  %v327_v42 = vld [vmem:[%s1345_s1 + $0x68] sm:$0xff]  ;;  %v344_v43 = vld [vmem:[%s1345_s1 + $0xf0] sm:$0xff]  ;;  %v345_v44 = vld [vmem:[%s1345_s1 + $0xf8] sm:$0xff]  ;;  %253 = vst.msk [vmem:[#allocation2 + $0x18] sm:$0xff] %vm249_vm0, %v1007_v16 }
  0x18   : > { %s740_s8 = sshll.u32 %s1116_s29, 4  ;;  %v847_v45 = vpack.c.bf16 %v327_v42, %v326_v41  ;;  %v849_v46 = vpack.c.bf16 %v345_v44, %v344_v43  ;;  %v328_v47 = vld [vmem:[%s1345_s1 + $0x70] sm:$0xff]  ;;  %v329_v48 = vld [vmem:[%s1345_s1 + $0x78] sm:$0xff]  ;;  %254 = vst.msk [vmem:[#allocation2 + $0x20] sm:$0xff] %vm249_vm0, %v1007_v16  ;;  %255 = vst.msk [vmem:[#allocation2 + $0x28] sm:$0xff] %vm249_vm0, %v1007_v16 }
  0x19   : > { %s1134_s21 = scalar_lea.vmem %s1344_s0, %s740_s8  ;;  %v851_v49 = vpack.c.bf16 %v329_v48, %v328_v47  ;;  %256 = vst.msk [vmem:[#allocation2 + $0x30] sm:$0xff] %vm249_vm0, %v1007_v16  ;;  %257 = vst.msk [vmem:[#allocation2 + $0x38] sm:$0xff] %vm249_vm0, %v1007_v16 }
  0x1a   : > { %v283_v25 = vld [vmem:[%s1134_s21 + $0x8] sm:$0xff]  ;;  %832 = vmatpush3.bf16.msra.mxu0 %v831_v19  ;;  %863 = vmatpush3.bf16.msra.mxu1 %v831_v19  ;;  %v282_v50 = vld [vmem:[%s1134_s21] sm:$0xff]  ;;  %v285_v52 = vld [vmem:[%s1134_s21 + $0x18] sm:$0xff]  ;;  %258 = vst.msk [vmem:[#allocation2 + $0x40] sm:$0xff] %vm249_vm0, %v1007_v16 }
  0x1b   : > { %410 = vmatprep.mubr.f32.mxu0 %v283_v25  ;;  %834 = vmatprep.subr.bf16.mxu0 %v833_v20  ;;  %v299_v30 = vld [vmem:[%s1134_s21 + $0x88] sm:$0xff]  ;;  %v298_v51 = vld [vmem:[%s1134_s21 + $0x80] sm:$0xff]  ;;  %v301_v53 = vld [vmem:[%s1134_s21 + $0x98] sm:$0xff]  ;;  %259 = vst.msk [vmem:[#allocation2 + $0x48] sm:$0xff] %vm249_vm0, %v1007_v16 }
  0x1c   : > { %856 = vmatprep.subr.bf16.mxu1 %v833_v20  ;;  %450 = vmatprep.mubr.f32.mxu1 %v299_v30  ;;  %v284_v54 = vld [vmem:[%s1134_s21 + $0x10] sm:$0xff]  ;;  %v287_v56 = vld [vmem:[%s1134_s21 + $0x28] sm:$0xff]  ;;  %v286_v58 = vld [vmem:[%s1134_s21 + $0x20] sm:$0xff]  ;;  %260 = vst.msk [vmem:[#allocation2 + $0x50] sm:$0xff] %vm249_vm0, %v1007_v16 }
  0x1d   : > { %v300_v55 = vld [vmem:[%s1134_s21 + $0x90] sm:$0xff]  ;;  %v303_v57 = vld [vmem:[%s1134_s21 + $0xa8] sm:$0xff]  ;;  %v302_v59 = vld [vmem:[%s1134_s21 + $0xa0] sm:$0xff]  ;;  %261 = vst.msk [vmem:[#allocation2 + $0x58] sm:$0xff] %vm249_vm0, %v1007_v16 }
  0x1e   : > { %836 = vmatpush3.bf16.msra.mxu0 %v835_v26  ;;  %864 = vmatpush3.bf16.msra.mxu1 %v835_v26  ;;  %v289_v60 = vld [vmem:[%s1134_s21 + $0x38] sm:$0xff]  ;;  %v288_v62 = vld [vmem:[%s1134_s21 + $0x30] sm:$0xff]  ;;  %v291_v0 = vld [vmem:[%s1134_s21 + $0x48] sm:$0xff]  ;;  %262 = vst.msk [vmem:[#allocation2 + $0x60] sm:$0xff] %vm249_vm0, %v1007_v16 }
  0x1f   : > { %838 = vmatprep.subr.bf16.mxu0 %v837_v27  ;;  %857 = vmatprep.subr.bf16.mxu1 %v837_v27  ;;  %v305_v61 = vld [vmem:[%s1134_s21 + $0xb8] sm:$0xff]  ;;  %v304_v63 = vld [vmem:[%s1134_s21 + $0xb0] sm:$0xff]  ;;  %v307_v1 = vld [vmem:[%s1134_s21 + $0xc8] sm:$0xff]  ;;  %263 = vst.msk [vmem:[#allocation2 + $0x68] sm:$0xff] %vm249_vm0, %v1007_v16 }
  0x20   : > { %v290_v2 = vld [vmem:[%s1134_s21 + $0x40] sm:$0xff]  ;;  %v293_v4 = vld [vmem:[%s1134_s21 + $0x58] sm:$0xff]  ;;  %v292_v6 = vld [vmem:[%s1134_s21 + $0x50] sm:$0xff]  ;;  %264 = vst.msk [vmem:[#allocation2 + $0x70] sm:$0xff] %vm249_vm0, %v1007_v16 }
  0x21   : > { %v306_v3 = vld [vmem:[%s1134_s21 + $0xc0] sm:$0xff]  ;;  %v309_v5 = vld [vmem:[%s1134_s21 + $0xd8] sm:$0xff]  ;;  %v308_v7 = vld [vmem:[%s1134_s21 + $0xd0] sm:$0xff]  ;;  %265 = vst.msk [vmem:[#allocation2 + $0x78] sm:$0xff] %vm249_vm0, %v1007_v16 }
  0x22   : > { %840 = vmatpush3.bf16.msra.mxu0 %v839_v33  ;;  %865 = vmatpush3.bf16.msra.mxu1 %v839_v33  ;;  %v295_v8 = vld [vmem:[%s1134_s21 + $0x68] sm:$0xff]  ;;  %v294_v10 = vld [vmem:[%s1134_s21 + $0x60] sm:$0xff]  ;;  %v297_v12 = vld [vmem:[%s1134_s21 + $0x78] sm:$0xff] }
  0x23   : > { %842 = vmatprep.subr.bf16.mxu0 %v841_v34  ;;  %858 = vmatprep.subr.bf16.mxu1 %v841_v34  ;;  %v311_v9 = vld [vmem:[%s1134_s21 + $0xe8] sm:$0xff]  ;;  %v310_v11 = vld [vmem:[%s1134_s21 + $0xe0] sm:$0xff]  ;;  %v313_v13 = vld [vmem:[%s1134_s21 + $0xf8] sm:$0xff] }
  0x24   : > { %v296_v14 = vld [vmem:[%s1134_s21 + $0x70] sm:$0xff]  ;;  %v266_v19 = vld [vmem:[#allocation2] sm:$0xff]  ;;  %v267_v29 = vld [vmem:[#allocation2 + $0x8] sm:$0xff] }
  0x25   : > { %v312_v15 = vld [vmem:[%s1134_s21 + $0xf0] sm:$0xff]  ;;  %v274_v21 = vld [vmem:[#allocation2 + $0x40] sm:$0xff]  ;;  %v275_v31 = vld [vmem:[#allocation2 + $0x48] sm:$0xff]  ;;  %s736_s21 = sshll.u32 %s1116_s29, 3  ;;  %s219_s29 = sand.u32 1, %s989_s13  }
  0x26   : > { %844 = vmatpush3.bf16.msra.mxu0 %v843_v39  ;;  %866 = vmatpush3.bf16.msra.mxu1 %v843_v39  ;;  %v268_v39 = vld [vmem:[#allocation2 + $0x10] sm:$0xff]  ;;  %s1250_s8 = scalar_lea.vmem %s1346_s2, %s736_s21  ;;  %s220_s9 = scalar_lea.vmem [#allocation3], %s219_s29 }
  0x27   : > { %846 = vmatprep.subr.bf16.mxu0 %v845_v40  ;;  %859 = vmatprep.subr.bf16.mxu1 %v845_v40  ;;  %v276_v41 = vld [vmem:[#allocation2 + $0x50] sm:$0xff]  ;;  %s630_s10 = sshll.u32 %s220_s9, 4  ;;  %s618_s23 = scalar_lea.sflag [#allocation4], %s219_s29  ;;  %s1293_s10 = int_to_ptr.vmem [resolvable:$true] %s630_s10 }
  0x28   : > { %s927_s26 = scalar_lea.vmem %s1293_s10, 16  ;;  %p934_p1 = scmp.lt.s32.totalorder %s1293_s10, %s932_s28 }
  0x29   : > { %p928_p12 = scmp.ne.s32.totalorder %s1293_s10, %s927_s26  ;;  %p935_p2 = scmp.lt.s32.totalorder %s933_s30, %s927_s26 }
  0x2a   : > { %848 = vmatpush3.bf16.msra.mxu0 %v847_v45  ;;  %867 = vmatpush3.bf16.msra.mxu1 %v847_v45 }
  0x2b   : > { %850 = vmatprep.subr.bf16.mxu0 %v849_v46  ;;  %860 = vmatprep.subr.bf16.mxu1 %v849_v46  ;;  %p929_p13 = pnand %p928_p12, %p1067_p4  ;;  %p936_p3 = por %p935_p2, %p934_p1 }
  0x2d   : > { %p930_p0 = pneg %p929_p13 }
  0x2e   : > { %852 = vmatpush3.bf16.msra.mxu0 %v851_v49  ;;  %868 = vmatpush3.bf16.msra.mxu1 %v851_v49  ;;  %v269_v49 = vld [vmem:[#allocation2 + $0x18] sm:$0xff] }
  0x2f   : > { %p937_p5 = pnand %p936_p3, %p930_p0 }
  0x31   : > { %411 = vmatmul.mubr.f32.vlgmr.msra.gmra.mrb[0].mxu0 %v282_v50  ;;  %451 = vmatmul.mubr.f32.vlgmr.msra.gmra.mrb[0].mxu1 %v298_v51  ;;  %v277_v51 = vld [vmem:[#allocation2 + $0x58] sm:$0xff] }
  0x32   : > { %415 = vmatprep.mubr.f32.mxu0 %v285_v52  ;;  %455 = vmatprep.mubr.f32.mxu1 %v301_v53 }
  0x35   : > { %416 = vmatmul.mubr.f32.gmra.mrb[2].mxu0 %v284_v54  ;;  %456 = vmatmul.mubr.f32.gmra.mrb[2].mxu1 %v300_v55 }
  0x36   : > { %420 = vmatprep.mubr.f32.mxu0 %v287_v56  ;;  %460 = vmatprep.mubr.f32.mxu1 %v303_v57 }
  0x39   : > { %421 = vmatmul.mubr.f32.gmra.mrb[4].mxu0 %v286_v58  ;;  %461 = vmatmul.mubr.f32.gmra.mrb[4].mxu1 %v302_v59  ;;  %v270_v59 = vld [vmem:[#allocation2 + $0x20] sm:$0xff] }
  0x3a   : > { %425 = vmatprep.mubr.f32.mxu0 %v289_v60  ;;  %465 = vmatprep.mubr.f32.mxu1 %v305_v61  ;;  %v278_v61 = vld [vmem:[#allocation2 + $0x60] sm:$0xff] }
  0x3d   : > { %426 = vmatmul.mubr.f32.gmra.mrb[6].mxu0 %v288_v62  ;;  %466 = vmatmul.mubr.f32.gmra.mrb[6].mxu1 %v304_v63 }
  0x3e   : > { %430 = vmatprep.mubr.f32.mxu0 %v291_v0  ;;  %470 = vmatprep.mubr.f32.mxu1 %v307_v1 }
  0x41   : > { %431 = vmatmul.mubr.f32.gmra.mrb[8].mxu0 %v290_v2  ;;  %471 = vmatmul.mubr.f32.gmra.mrb[8].mxu1 %v306_v3 }
  0x42   : > { %435 = vmatprep.mubr.f32.mxu0 %v293_v4  ;;  %475 = vmatprep.mubr.f32.mxu1 %v309_v5  ;;  %v271_v5 = vld [vmem:[#allocation2 + $0x28] sm:$0xff] }
  0x45   : > { %436 = vmatmul.mubr.f32.gmra.mrb[10].mxu0 %v292_v6  ;;  %476 = vmatmul.mubr.f32.gmra.mrb[10].mxu1 %v308_v7  ;;  %v279_v7 = vld [vmem:[#allocation2 + $0x68] sm:$0xff] }
  0x46   : > { %440 = vmatprep.mubr.f32.mxu0 %v295_v8  ;;  %480 = vmatprep.mubr.f32.mxu1 %v311_v9 }
  0x49   : > { %441 = vmatmul.mubr.f32.gmra.mrb[12].mxu0 %v294_v10  ;;  %481 = vmatmul.mubr.f32.gmra.mrb[12].mxu1 %v310_v11  ;;  %v528_v11 = vld [vmem:[%s1250_s8 + $0x8] sm:$0xff] }
  0x4a   : > { %445 = vmatprep.mubr.f32.mxu0 %v297_v12  ;;  %485 = vmatprep.mubr.f32.mxu1 %v313_v13 }
  0x4d   : > { %446 = vmatmul.mubr.f32.gmra.mrb[14].mxu0 %v296_v14  ;;  %486 = vmatmul.mubr.f32.gmra.mrb[14].mxu1 %v312_v15 }
 0x104   : > { %v773_v17 = vpop.f32.mrb[0].mxu0  ;;  %v797_v18 = vpop.f32.mrb[0].mxu1 }
 0x105   : > { %v774_v20 = vpop.f32.mrb[1].mxu0  ;;  %v798_v22 = vpop.f32.mrb[1].mxu1 }
 0x106   : > { %v775_v23 = vadd.f32 %v774_v20, %v773_v17  ;;  %v799_v24 = vadd.f32 %v798_v22, %v797_v18  ;;  %v527_v17 = vld [vmem:[%s1250_s8] sm:$0xff]  ;;  %v529_v18 = vld [vmem:[%s1250_s8 + $0x10] sm:$0xff] }
 0x107   : > { %v272_v20 = vld [vmem:[#allocation2 + $0x30] sm:$0xff] }
 0x108   : > { %v491_v25 = vadd.f32 %v775_v23, %v266_v19  ;;  %v776_v26 = vpop.f32.mrb[2].mxu0  ;;  %v499_v27 = vadd.f32 %v799_v24, %v274_v21  ;;  %v800_v28 = vpop.f32.mrb[2].mxu1  ;;  %v280_v22 = vld [vmem:[#allocation2 + $0x70] sm:$0xff] }
 0x109   : > { %v777_v30 = vpop.f32.mrb[3].mxu0  ;;  %v801_v32 = vpop.f32.mrb[3].mxu1 }
 0x10a   : > { %508 = vst.msk [vmem:[#allocation2] sm:$0xff] %vm249_vm0, %v491_v25  ;;  %v778_v33 = vadd.f32 %v777_v30, %v776_v26  ;;  %516 = vst.msk [vmem:[#allocation2 + $0x40] sm:$0xff] %vm249_vm0, %v499_v27  ;;  %v802_v34 = vadd.f32 %v801_v32, %v800_v28  ;;  %v530_v28 = vld [vmem:[%s1250_s8 + $0x18] sm:$0xff] }
 0x10c   : > { %v492_v35 = vadd.f32 %v778_v33, %v267_v29  ;;  %v779_v36 = vpop.f32.mrb[4].mxu0  ;;  %v500_v37 = vadd.f32 %v802_v34, %v275_v31  ;;  %v803_v38 = vpop.f32.mrb[4].mxu1 }
 0x10d   : > { %v780_v40 = vpop.f32.mrb[5].mxu0  ;;  %v804_v42 = vpop.f32.mrb[5].mxu1 }
 0x10e   : > { %509 = vst.msk [vmem:[#allocation2 + $0x8] sm:$0xff] %vm249_vm0, %v492_v35  ;;  %v781_v43 = vadd.f32 %v780_v40, %v779_v36  ;;  %517 = vst.msk [vmem:[#allocation2 + $0x48] sm:$0xff] %vm249_vm0, %v500_v37  ;;  %v805_v44 = vadd.f32 %v804_v42, %v803_v38  ;;  %v531_v35 = vld [vmem:[%s1250_s8 + $0x20] sm:$0xff]  ;;  %v273_v37 = vld [vmem:[#allocation2 + $0x38] sm:$0xff] }
 0x110   : > { %v493_v45 = vadd.f32 %v781_v43, %v268_v39  ;;  %v782_v46 = vpop.f32.mrb[6].mxu0  ;;  %v501_v47 = vadd.f32 %v805_v44, %v276_v41  ;;  %v806_v48 = vpop.f32.mrb[6].mxu1  ;;  %v281_v39 = vld [vmem:[#allocation2 + $0x78] sm:$0xff] }
 0x111   : > { %v783_v50 = vpop.f32.mrb[7].mxu0  ;;  %v807_v52 = vpop.f32.mrb[7].mxu1  ;;  %v543_v19 = vld [vmem:[#allocation2] sm:$0xff] }
 0x112   : > { %510 = vst.msk [vmem:[#allocation2 + $0x10] sm:$0xff] %vm249_vm0, %v493_v45  ;;  %v784_v53 = vadd.f32 %v783_v50, %v782_v46  ;;  %518 = vst.msk [vmem:[#allocation2 + $0x50] sm:$0xff] %vm249_vm0, %v501_v47  ;;  %v808_v54 = vadd.f32 %v807_v52, %v806_v48  ;;  %v559_v30 = vmul.f32 %v543_v19, %v527_v17  ;;  %v532_v46 = vld [vmem:[%s1250_s8 + $0x28] sm:$0xff] }
 0x114   : > { %v494_v55 = vadd.f32 %v784_v53, %v269_v49  ;;  %v785_v56 = vpop.f32.mrb[8].mxu0  ;;  %v502_v57 = vadd.f32 %v808_v54, %v277_v51  ;;  %v809_v58 = vpop.f32.mrb[8].mxu1  ;;  %v575_v47 = vsel %vm249_vm0, %v559_v30, 0.0 }
 0x115   : > { %v786_v60 = vpop.f32.mrb[9].mxu0  ;;  %v810_v62 = vpop.f32.mrb[9].mxu1  ;;  %v544_v12 = vld [vmem:[#allocation2 + $0x8] sm:$0xff] }
 0x116   : > { %511 = vst.msk [vmem:[#allocation2 + $0x18] sm:$0xff] %vm249_vm0, %v494_v55  ;;  %v787_v63 = vadd.f32 %v786_v60, %v785_v56  ;;  %519 = vst.msk [vmem:[#allocation2 + $0x58] sm:$0xff] %vm249_vm0, %v502_v57  ;;  %v811_v0 = vadd.f32 %v810_v62, %v809_v58  ;;  %v560_v27 = vmul.f32 %v544_v12, %v528_v11  ;;  %v533_v56 = vld [vmem:[%s1250_s8 + $0x30] sm:$0xff] }
 0x118   : > { %v495_v1 = vadd.f32 %v787_v63, %v270_v59  ;;  %v788_v2 = vpop.f32.mrb[10].mxu0  ;;  %v503_v3 = vadd.f32 %v811_v0, %v278_v61  ;;  %v812_v4 = vpop.f32.mrb[10].mxu1  ;;  %v576_v45 = vsel %vm249_vm0, %v560_v27, 0.0  ;;  %v534_v63 = vld [vmem:[%s1250_s8 + $0x38] sm:$0xff]  ;;  %v535_v0 = vld [vmem:[%s1250_s8 + $0x40] sm:$0xff] }
 0x119   : > { %v789_v6 = vpop.f32.mrb[11].mxu0  ;;  %v813_v8 = vpop.f32.mrb[11].mxu1  ;;  %v545_v24 = vld [vmem:[#allocation2 + $0x10] sm:$0xff]  ;;  %v577_v53 = vadd.f32 %v576_v45, %v575_v47 }
 0x11a   : > { %512 = vst.msk [vmem:[#allocation2 + $0x20] sm:$0xff] %vm249_vm0, %v495_v1  ;;  %v790_v9 = vadd.f32 %v789_v6, %v788_v2  ;;  %520 = vst.msk [vmem:[#allocation2 + $0x60] sm:$0xff] %vm249_vm0, %v503_v3  ;;  %v814_v10 = vadd.f32 %v813_v8, %v812_v4  ;;  %v561_v36 = vmul.f32 %v545_v24, %v529_v18  ;;  %v551_v1 = vld [vmem:[#allocation2 + $0x40] sm:$0xff]  ;;  %v536_v4 = vld [vmem:[%s1250_s8 + $0x48] sm:$0xff] }
 0x11b   : > { %v552_v6 = vld [vmem:[#allocation2 + $0x48] sm:$0xff]  ;;  %v553_v11 = vld [vmem:[#allocation2 + $0x50] sm:$0xff] }
 0x11c   : > { %v496_v13 = vadd.f32 %v790_v9, %v271_v5  ;;  %v791_v14 = vpop.f32.mrb[12].mxu0  ;;  %v504_v15 = vadd.f32 %v814_v10, %v279_v7  ;;  %v815_v16 = vpop.f32.mrb[12].mxu1  ;;  %v578_v51 = vsel %vm249_vm0, %v561_v36, 0.0  ;;  %v567_v9 = vmul.f32 %v551_v1, %v535_v0  ;;  %v537_v10 = vld [vmem:[%s1250_s8 + $0x50] sm:$0xff] }
 0x11d   : > { %v792_v21 = vpop.f32.mrb[13].mxu0  ;;  %v816_v23 = vpop.f32.mrb[13].mxu1  ;;  %v546_v29 = vld [vmem:[#allocation2 + $0x18] sm:$0xff]  ;;  %v579_v57 = vadd.f32 %v578_v51, %v577_v53  ;;  %v569_v18 = vmul.f32 %v553_v11, %v537_v10 }
 0x11e   : > { %513 = vst.msk [vmem:[#allocation2 + $0x28] sm:$0xff] %vm249_vm0, %v496_v13  ;;  %v793_v25 = vadd.f32 %v792_v21, %v791_v14  ;;  %521 = vst.msk [vmem:[#allocation2 + $0x68] sm:$0xff] %vm249_vm0, %v504_v15  ;;  %v817_v26 = vadd.f32 %v816_v23, %v815_v16  ;;  %v562_v44 = vmul.f32 %v546_v29, %v530_v28  ;;  %v538_v15 = vld [vmem:[%s1250_s8 + $0x58] sm:$0xff]  ;;  %v590_v19 = vsel %vm249_vm0, %v567_v9, 0.0  ;;  %v541_v28 = vld [vmem:[%s1250_s8 + $0x70] sm:$0xff] }
 0x11f   : > { %v568_v13 = vmul.f32 %v552_v6, %v536_v4  ;;  %v554_v16 = vld [vmem:[#allocation2 + $0x58] sm:$0xff]  ;;  %v594_v30 = vsel %vm249_vm0, %v569_v18, 0.0 }
 0x120   : > { %v497_v31 = vadd.f32 %v793_v25, %v272_v20  ;;  %v794_v32 = vpop.f32.mrb[14].mxu0  ;;  %v505_v33 = vadd.f32 %v817_v26, %v280_v22  ;;  %v818_v34 = vpop.f32.mrb[14].mxu1  ;;  %v580_v55 = vsel %vm249_vm0, %v562_v44, 0.0  ;;  %v539_v20 = vld [vmem:[%s1250_s8 + $0x60] sm:$0xff]  ;;  %v570_v23 = vmul.f32 %v554_v16, %v538_v15  ;;  %v540_v25 = vld [vmem:[%s1250_s8 + $0x68] sm:$0xff] }
 0x121   : > { %v795_v38 = vpop.f32.mrb[15].mxu0  ;;  %v819_v40 = vpop.f32.mrb[15].mxu1  ;;  %v547_v41 = vld [vmem:[#allocation2 + $0x20] sm:$0xff]  ;;  %v581_v60 = vadd.f32 %v580_v55, %v579_v57  ;;  %v592_v24 = vsel %vm249_vm0, %v568_v13, 0.0 }
 0x122   : > { %514 = vst.msk [vmem:[#allocation2 + $0x30] sm:$0xff] %vm249_vm0, %v497_v31  ;;  %v796_v42 = vadd.f32 %v795_v38, %v794_v32  ;;  %522 = vst.msk [vmem:[#allocation2 + $0x70] sm:$0xff] %vm249_vm0, %v505_v33  ;;  %v820_v43 = vadd.f32 %v819_v40, %v818_v34  ;;  %v563_v50 = vmul.f32 %v547_v41, %v531_v35  ;;  %v555_v21 = vld [vmem:[#allocation2 + $0x60] sm:$0xff]  ;;  %v542_v31 = vld [vmem:[%s1250_s8 + $0x78] sm:$0xff]  ;;  %v596_v36 = vsel %vm249_vm0, %v570_v23, 0.0 }
 0x123   : > { %v571_v29 = vmul.f32 %v555_v21, %v539_v20 }
 0x124   : > { %v498_v48 = vadd.f32 %v796_v42, %v273_v37  ;;  %v506_v49 = vadd.f32 %v820_v43, %v281_v39  ;;  %v582_v58 = vsel %vm249_vm0, %v563_v50, 0.0 }
 0x125   : > { %v548_v52 = vld [vmem:[#allocation2 + $0x28] sm:$0xff]  ;;  %v583_v2 = vadd.f32 %v582_v58, %v581_v60  ;;  %v598_v40 = vsel %vm249_vm0, %v571_v29, 0.0 }
 0x126   : > { %515 = vst.msk [vmem:[#allocation2 + $0x38] sm:$0xff] %vm249_vm0, %v498_v48  ;;  %523 = vst.msk [vmem:[#allocation2 + $0x78] sm:$0xff] %vm249_vm0, %v506_v49  ;;  %v564_v54 = vmul.f32 %v548_v52, %v532_v46  ;;  %v556_v26 = vld [vmem:[#allocation2 + $0x68] sm:$0xff] }
 0x127   : > { %v572_v35 = vmul.f32 %v556_v26, %v540_v25 }
 0x128   : > { %v584_v62 = vsel %vm249_vm0, %v564_v54, 0.0 }
 0x129   : > { %v549_v59 = vld [vmem:[#allocation2 + $0x30] sm:$0xff]  ;;  %v585_v7 = vadd.f32 %v584_v62, %v583_v2  ;;  %v600_v42 = vsel %vm249_vm0, %v572_v35, 0.0 }
 0x12a   : > { %v565_v61 = vmul.f32 %v549_v59, %v533_v56  ;;  %v557_v32 = vld [vmem:[#allocation2 + $0x70] sm:$0xff] }
 0x12b   : > { %v573_v38 = vmul.f32 %v557_v32, %v541_v28 }
 0x12c   : > { %v586_v3 = vsel %vm249_vm0, %v565_v61, 0.0 }
 0x12d   : > { %v550_v5 = vld [vmem:[#allocation2 + $0x38] sm:$0xff]  ;;  %v587_v12 = vadd.f32 %v586_v3, %v585_v7  ;;  %v602_v44 = vsel %vm249_vm0, %v573_v38, 0.0 }
 0x12e   : > { %v566_v8 = vmul.f32 %v550_v5, %v534_v63  ;;  %v558_v33 = vld [vmem:[#allocation2 + $0x78] sm:$0xff] }
 0x12f   : > { %v574_v39 = vmul.f32 %v558_v33, %v542_v31 }
 0x130   : > { %v588_v14 = vsel %vm249_vm0, %v566_v8, 0.0 }
 0x131   : > { %v589_v17 = vadd.f32 %v588_v14, %v587_v12  ;;  %v604_v45 = vsel %vm249_vm0, %v574_v39, 0.0 }
 0x133   : > { %v591_v22 = vadd.f32 %v590_v19, %v589_v17 }
 0x135   : > { %v593_v27 = vadd.f32 %v592_v24, %v591_v22 }
 0x137   : > { %v595_v34 = vadd.f32 %v594_v30, %v593_v27 }
 0x139   : > { %v597_v37 = vadd.f32 %v596_v36, %v595_v34 }
 0x13b   : > { %v599_v41 = vadd.f32 %v598_v40, %v597_v37 }
 0x13d   : > { %v601_v43 = vadd.f32 %v600_v42, %v599_v41 }
 0x13f   : > { %v603_v46 = vadd.f32 %v602_v44, %v601_v43 }
 0x141   : > { %v605_v47 = vadd.f32 %v604_v45, %v603_v46 }
 0x143   : > { %606 = vadd.xlane.f32.xlu0 %v605_v47 }
 0x1d0   : > { %v607_v48 = vpop.xlane.xlu0 %606 }
 0x1d1   : > { %v608_v49 = vrot.slane %v607_v48, 4 }
 0x1d3   : > { %v609_v50 = vadd.f32 %v608_v49, %v607_v48 }
 0x1d5   : > { %v610_v51 = vrot.slane %v609_v50, 2 }
 0x1d7   : > { %v611_v52 = vadd.f32 %v610_v51, %v609_v50 }
 0x1d9   : > { %v612_v53 = vrot.slane %v611_v52, 1 }
 0x1db   : > { %v613_v54 = vadd.f32 %v612_v53, %v611_v52 }
 0x1dd   : > { %869 = vpush %v613_v54 }
 0x20e   : > { %s870_s11 = spop %869 }
 0x20f   : > { %v615_v55 = vstv %s870_s11 }
 0x210   : > { %616 = vst [vmem:[%s220_s9] sm:$0x1] %v615_v55 }
 0x211   : > { %940 = shalt.err (!%p937_p5)
}
 0x212   : > { %s941_s5 = scalar_lea.hbm %s1299_s19, 16  ;;  %s945_s6 = scalar_lea.hbm %s1347_s3, 32 }
 0x213   : > { %p942_p6 = scmp.ne.s32.totalorder %s1299_s19, %s941_s5  ;;  %p946_p10 = scmp.lt.u32.totalorder %s1299_s19, %s1347_s3 }
 0x214   : > { %p947_p11 = scmp.lt.u32.totalorder %s945_s6, %s941_s5  ;;  %p949_p13 = scmp.lt.u32.totalorder %s941_s5, %s1299_s19 }
 0x215   : > { %p943_p7 = pnand %p942_p6, %p1067_p4 }
 0x216   : > { %p948_p12 = por %p947_p11, %p946_p10 }
 0x217   : > { %p944_p9 = pneg %p943_p7 }
 0x218   : > { %p950_p0 = por %p949_p13, %p948_p12 }
 0x21a   : > { %p951_p1 = pnand %p950_p0, %p944_p9 }
 0x21c   : > { %954 = shalt.err (!%p951_p1)
}
 0x21d   : > { %871 = dma.vmem_to_hbm [thread:$0]  (%p1067_p4), %s1293_s10, 16, %s1299_s19, %s618_s23  }
 0x21e PF: > { %p877_p2 = scmp.ge.s32.totalorder %s1005_s17, 2  ;;  %s642_s29 = sand.u32 1, %s985_s12  }
 0x21f   : > { %s643_s9 = scalar_lea.sflag [#allocation4], %s642_s29 }
 0x220   : > { %p874_p3 = pnand %p877_p2, %p1074_p8 }
 0x222   : > { %980 = dma.done.wait (!%p874_p3), %s643_s9, 16  }
 0x223   : > { %982 = vsyncadd (!%p874_p3), %s643_s9, 4294967280  ;;  %s16_s17 = sadd.s32 1, %s1005_s17   ;;  %s1350_s12 = smov %s989_s13 }
 0x224   : > { %p13_p5 = scmp.ge.s32.totalorder %s16_s17, 4   ;;  %s1351_s13 = smov %s993_s14 }
 0x225   : > { %s1352_s14 = smov %s1080_s25  ;;  %s1353_s15 = smov %s1001_s16 }
 0x226   : > { %s1354_s16 = smov %s1356_s20  ;;  %15 = sbr.rel (!%p13_p5) target bundleno = 4 (0x4), region = 81 }
 0x22d   :  { %647 = vsyncpa [#allocation4], 1 }
 0x22e   :  { %649 = vsyncpa [#allocation4 + $0x1], 1 }

</bundles_post_ra>
